<compile_context>
chip_gen: v6e
topology: v6e:2x2x1
jax: 0.10.0
libtpu: 0.0.40
codegen_flags: <defaults>
</compile_context>

<pallas_src>
import math

import jax
import jax.numpy as jnp
import numpy as np
from jax.experimental import pallas as pl
from jax.experimental.pallas import tpu as pltpu

_LN_EPS = 1e-5
_GELU_C = math.sqrt(2.0 / math.pi)


def _row_tile(nrows):
    """Row-tile size: 128+ rows per step at realistic sizes, 8-row tiles for
    small demos (keeps sublane dim a multiple of 8), else the full extent."""
    for t in (512, 256, 128):
        if nrows % t == 0:
            return t
    if nrows % 8 == 0:
        return 8
    return nrows


def _gelu_tanh(u):
    # NewGELUActivation: 0.5*u*(1+tanh(sqrt(2/pi)*(u+0.044715*u^3)))
    return 0.5 * u * (1.0 + jnp.tanh(_GELU_C * (u + 0.044715 * u * u * u)))


def _layernorm(x, gamma, beta):
    mu = jnp.mean(x, axis=-1, keepdims=True)
    xc = x - mu
    var = jnp.mean(xc * xc, axis=-1, keepdims=True)
    return xc * jax.lax.rsqrt(var + _LN_EPS) * gamma + beta


# ---------------------------------------------------------------------------
# Kernel 1: embedding gather + positional encoding add (scalar-prefetch gather)
# ---------------------------------------------------------------------------
def _embed_pos_kernel(ids_ref, emb_ref, pe_ref, o_ref):
    del ids_ref  # consumed by the data-dependent index_maps
    o_ref[...] = emb_ref[...] + pe_ref[...]


def embed_positional(ids_flat, emb_table, pe_table, seq_len):
    rows = ids_flat.shape[0]
    vocab, d = emb_table.shape
    out = pl.pallas_call(
        _embed_pos_kernel,
        out_shape=jax.ShapeDtypeStruct((rows, 1, d), jnp.float32),
        grid_spec=pltpu.PrefetchScalarGridSpec(
            num_scalar_prefetch=1,
            grid=(rows,),
            in_specs=[
                pl.BlockSpec((1, 1, d), lambda i, ids: (ids[i], 0, 0)),       # emb row gather
                pl.BlockSpec((1, 1, d), lambda i, ids: (i % seq_len, 0, 0)),  # pe row
            ],
            out_specs=pl.BlockSpec((1, 1, d), lambda i, ids: (i, 0, 0)),
        ),
        compiler_params=pltpu.CompilerParams(dimension_semantics=("arbitrary",)),
    )(ids_flat,
      emb_table.reshape(vocab, 1, d),
      pe_table[:seq_len].reshape(seq_len, 1, d))
    return out.reshape(rows, d)


# ---------------------------------------------------------------------------
# Kernel 2: fused LayerNorm + matmul (used for LN1 -> concatenated QKV)
# ---------------------------------------------------------------------------
def _ln_matmul_kernel(x_ref, g_ref, b_ref, w_ref, o_ref):
    h = _layernorm(x_ref[...], g_ref[...], b_ref[...])
    o_ref[...] = jnp.dot(h, w_ref[...], preferred_element_type=jnp.float32)


def ln_matmul(x, gamma, beta, w):
    rows, d = x.shape
    d_out = w.shape[1]
    tm = _row_tile(rows)
    return pl.pallas_call(
        _ln_matmul_kernel,
        out_shape=jax.ShapeDtypeStruct((rows, d_out), jnp.float32),
        grid=(rows // tm,),
        in_specs=[
            pl.BlockSpec((tm, d), lambda i: (i, 0)),
            pl.BlockSpec((1, d), lambda i: (0, 0)),
            pl.BlockSpec((1, d), lambda i: (0, 0)),
            pl.BlockSpec((d, d_out), lambda i: (0, 0)),
        ],
        out_specs=pl.BlockSpec((tm, d_out), lambda i: (i, 0)),
        compiler_params=pltpu.CompilerParams(dimension_semantics=("parallel",)),
    )(x, gamma.reshape(1, d), beta.reshape(1, d), w)


# ---------------------------------------------------------------------------
# Kernel 3: scaled-dot-product attention, one (batch, head) tile per grid step
# ---------------------------------------------------------------------------
def _attention_kernel(q_ref, k_ref, v_ref, o_ref):
    q = q_ref[0, 0]                                   # (S, hd)
    k = k_ref[0, 0]
    v = v_ref[0, 0]
    scale = 1.0 / math.sqrt(q.shape[-1])
    s = jax.lax.dot_general(q, k, (((1,), (1,)), ((), ())),
                            preferred_element_type=jnp.float32) * scale
    s = s - jnp.max(s, axis=-1, keepdims=True)
    p = jnp.exp(s)
    p = p / jnp.sum(p, axis=-1, keepdims=True)
    o_ref[0, 0] = jnp.dot(p, v, preferred_element_type=jnp.float32)


def attention(q, k, v):
    b, h, s, hd = q.shape
    spec = pl.BlockSpec((1, 1, s, hd), lambda i, j: (i, j, 0, 0))
    return pl.pallas_call(
        _attention_kernel,
        out_shape=jax.ShapeDtypeStruct((b, h, s, hd), jnp.float32),
        grid=(b, h),
        in_specs=[spec, spec, spec],
        out_specs=spec,
        compiler_params=pltpu.CompilerParams(
            dimension_semantics=("parallel", "parallel")),
    )(q, k, v)


# ---------------------------------------------------------------------------
# Kernel 4: matmul + residual add (attention output projection, bias=False)
# ---------------------------------------------------------------------------
def _matmul_residual_kernel(a_ref, w_ref, r_ref, o_ref):
    o_ref[...] = r_ref[...] + jnp.dot(a_ref[...], w_ref[...],
                                      preferred_element_type=jnp.float32)


def matmul_residual(a, w, resid):
    rows, d_in = a.shape
    d_out = w.shape[1]
    tm = _row_tile(rows)
    return pl.pallas_call(
        _matmul_residual_kernel,
        out_shape=jax.ShapeDtypeStruct((rows, d_out), jnp.float32),
        grid=(rows // tm,),
        in_specs=[
            pl.BlockSpec((tm, d_in), lambda i: (i, 0)),
            pl.BlockSpec((d_in, d_out), lambda i: (0, 0)),
            pl.BlockSpec((tm, d_out), lambda i: (i, 0)),
        ],
        out_specs=pl.BlockSpec((tm, d_out), lambda i: (i, 0)),
        compiler_params=pltpu.CompilerParams(dimension_semantics=("parallel",)),
    )(a, w, resid)


# ---------------------------------------------------------------------------
# Kernel 5: fused LayerNorm + MLP (fc1 -> GELU -> fc2) + residual
# ---------------------------------------------------------------------------
def _ln_mlp_residual_kernel(x_ref, g_ref, b_ref, w1_ref, b1_ref, w2_ref, b2_ref,
                            o_ref):
    x = x_ref[...]
    h = _layernorm(x, g_ref[...], b_ref[...])
    u = jnp.dot(h, w1_ref[...], preferred_element_type=jnp.float32) + b1_ref[...]
    u = _gelu_tanh(u)
    y = jnp.dot(u, w2_ref[...], preferred_element_type=jnp.float32) + b2_ref[...]
    o_ref[...] = x + y


def ln_mlp_residual(x, gamma, beta, w1, b1, w2, b2):
    rows, d = x.shape
    d_hidden = w1.shape[1]
    tm = _row_tile(rows)
    return pl.pallas_call(
        _ln_mlp_residual_kernel,
        out_shape=jax.ShapeDtypeStruct((rows, d), jnp.float32),
        grid=(rows // tm,),
        in_specs=[
            pl.BlockSpec((tm, d), lambda i: (i, 0)),
            pl.BlockSpec((1, d), lambda i: (0, 0)),
            pl.BlockSpec((1, d), lambda i: (0, 0)),
            pl.BlockSpec((d, d_hidden), lambda i: (0, 0)),
            pl.BlockSpec((1, d_hidden), lambda i: (0, 0)),
            pl.BlockSpec((d_hidden, d), lambda i: (0, 0)),
            pl.BlockSpec((1, d), lambda i: (0, 0)),
        ],
        out_specs=pl.BlockSpec((tm, d), lambda i: (i, 0)),
        compiler_params=pltpu.CompilerParams(dimension_semantics=("parallel",)),
    )(x, gamma.reshape(1, d), beta.reshape(1, d),
      w1, b1.reshape(1, d_hidden), w2, b2.reshape(1, d))


# ---------------------------------------------------------------------------
# Kernel 6: select last-unmasked token per batch row + L2 normalize
# ---------------------------------------------------------------------------
def _select_l2norm_kernel(idx_ref, x_ref, o_ref):
    del idx_ref  # consumed by the index_map
    row = x_ref[...]
    ss = jnp.sum(row * row, axis=-1, keepdims=True)
    o_ref[...] = row / jnp.sqrt(ss)


def select_l2norm(x_flat, token_idx, batch, seq_len):
    rows, d = x_flat.shape
    out = pl.pallas_call(
        _select_l2norm_kernel,
        out_shape=jax.ShapeDtypeStruct((batch, 1, d), jnp.float32),
        grid_spec=pltpu.PrefetchScalarGridSpec(
            num_scalar_prefetch=1,
            grid=(batch,),
            in_specs=[pl.BlockSpec((1, 1, d),
                                   lambda b, idx: (b * seq_len + idx[b], 0, 0))],
            out_specs=pl.BlockSpec((1, 1, d), lambda b, idx: (b, 0, 0)),
        ),
        compiler_params=pltpu.CompilerParams(dimension_semantics=("arbitrary",)),
    )(token_idx, x_flat.reshape(rows, 1, d))
    return out.reshape(batch, d)


# ---------------------------------------------------------------------------
# Forward pass
# ---------------------------------------------------------------------------
def encoder_block(x_flat, lp, batch, seq_len, num_heads):
    rows, d = x_flat.shape
    hd = d // num_heads

    # LN1 + fused QKV projection: single (B*S, D) x (D, 3D) matmul per tile.
    qkv = ln_matmul(x_flat, lp["ln1_g"], lp["ln1_b"], lp["w_qkv"])      # (R, 3D)
    q, k, v = jnp.split(qkv, 3, axis=-1)

    def to_heads(t):  # (R, D) -> (B, H, S, hd)  (layout glue)
        return t.reshape(batch, seq_len, num_heads, hd).transpose(0, 2, 1, 3)

    attn = attention(to_heads(q), to_heads(k), to_heads(v))             # (B,H,S,hd)
    attn = attn.transpose(0, 2, 1, 3).reshape(rows, d)

    # attention output projection (bias=False) + residual
    x_flat = matmul_residual(attn, lp["w_o"], x_flat)
    # LN2 + MLP (GELU-tanh) + residual, fully fused per row tile
    x_flat = ln_mlp_residual(x_flat, lp["ln2_g"], lp["ln2_b"],
                             lp["w_fc1"], lp["b_fc1"], lp["w_fc2"], lp["b_fc2"])
    return x_flat


def text_encoder_forward(text, mask, params, num_heads):
    batch, seq_len = text.shape
    rows = batch * seq_len

    ids = text.reshape(rows).astype(jnp.int32)
    x = embed_positional(ids, params["emb"], params["pe"], seq_len)     # (R, D)

    for lp in params["layers"]:
        x = encoder_block(x, lp, batch, seq_len, num_heads)

    # x[arange(B), sum(mask[:, 0], dim=1) - 1]
    token_idx = jnp.sum(mask[:, 0], axis=1).astype(jnp.int32) - 1        # (B,)
    # (projection skipped: undefined in the module -> identity)
    return select_l2norm(x, token_idx, batch, seq_len)                   # (B, D)


# ---------------------------------------------------------------------------
# Plain-JAX reference (mirrors the implemented semantics exactly)
# ---------------------------------------------------------------------------
def text_encoder_reference(text, mask, params, num_heads):
    batch, seq_len = text.shape
    d = params["emb"].shape[1]
    hd = d // num_heads
    x = params["emb"][text] + params["pe"][None, :seq_len, :]
    for lp in params["layers"]:
        h = _layernorm(x, lp["ln1_g"], lp["ln1_b"])
        q, k, v = jnp.split(h @ lp["w_qkv"], 3, axis=-1)

        def to_heads(t):
            return t.reshape(batch, seq_len, num_heads, hd).transpose(0, 2, 1, 3)

        qh, kh, vh = to_heads(q), to_heads(k), to_heads(v)
        scores = jnp.einsum("bhqd,bhkd->bhqk", qh, kh) / math.sqrt(hd)
        probs = jax.nn.softmax(scores, axis=-1)
        attn = jnp.einsum("bhqk,bhkd->bhqd", probs, vh)
        attn = attn.transpose(0, 2, 1, 3).reshape(batch, seq_len, d)
        x = x + attn @ lp["w_o"]
        h2 = _layernorm(x, lp["ln2_g"], lp["ln2_b"])
        u = _gelu_tanh(h2 @ lp["w_fc1"] + lp["b_fc1"])
        x = x + (u @ lp["w_fc2"] + lp["b_fc2"])
    token_idx = jnp.sum(mask[:, 0], axis=1).astype(jnp.int32) - 1
    sel = x[jnp.arange(batch), token_idx]
    return sel / jnp.linalg.norm(sel, axis=-1, keepdims=True)


if __name__ == "__main__":
    vocab_size, num_heads, num_layers, d_model, max_len = 50, 4, 2, 32, 16
    batch, seq_len = 2, 8

    key = jax.random.PRNGKey(0)
    k_emb, k_text, key = jax.random.split(key, 3)

    # sinusoidal positional-encoding table (PostionalEncoding buffer)
    position = jnp.arange(max_len, dtype=jnp.float32)[:, None]
    div_term = jnp.exp(jnp.arange(0, d_model, 2, dtype=jnp.float32)
                       * (-np.log(10000.0) / d_model))
    pe = jnp.zeros((max_len, d_model), dtype=jnp.float32)
    pe = pe.at[:, 0::2].set(jnp.sin(position * div_term))
    pe = pe.at[:, 1::2].set(jnp.cos(position * div_term))

    emb = 0.1 * jax.random.normal(k_emb, (vocab_size, d_model), jnp.float32)

    layers = []
    for _ in range(num_layers):
        ks = jax.random.split(key, 12)
        key = ks[0]
        layers.append({
            "ln1_g": 1.0 + 0.1 * jax.random.normal(ks[1], (d_model,), jnp.float32),
            "ln1_b": 0.1 * jax.random.normal(ks[2], (d_model,), jnp.float32),
            "w_qkv": jax.random.normal(ks[3], (d_model, 3 * d_model),
                                       jnp.float32) / math.sqrt(d_model),
            "w_o": jax.random.normal(ks[4], (d_model, d_model),
                                     jnp.float32) / math.sqrt(d_model),
            "ln2_g": 1.0 + 0.1 * jax.random.normal(ks[5], (d_model,), jnp.float32),
            "ln2_b": 0.1 * jax.random.normal(ks[6], (d_model,), jnp.float32),
            "w_fc1": jax.random.normal(ks[7], (d_model, 4 * d_model),
                                       jnp.float32) / math.sqrt(d_model),
            "b_fc1": 0.05 * jax.random.normal(ks[8], (4 * d_model,), jnp.float32),
            "w_fc2": jax.random.normal(ks[9], (4 * d_model, d_model),
                                       jnp.float32) / math.sqrt(4 * d_model),
            "b_fc2": 0.05 * jax.random.normal(ks[10], (d_model,), jnp.float32),
        })

    params = {"emb": emb, "pe": pe, "layers": layers}

    text = jax.random.randint(k_text, (batch, seq_len), 0, vocab_size)
    lengths = jnp.array([seq_len, seq_len - 3], dtype=jnp.int32)
    mask = (jnp.arange(seq_len)[None, :] < lengths[:, None]
            ).astype(jnp.int32)[:, None, :]                     # (B, 1, S)

    forward = jax.jit(text_encoder_forward, static_argnums=(3,))
    out = forward(text, mask, params, num_heads)
    out = jax.block_until_ready(out)

    ref = text_encoder_reference(text, mask, params, num_heads)
    np.testing.assert_allclose(np.asarray(out), np.asarray(ref),
                               rtol=1e-3, atol=1e-3)
    assert out.shape == (batch, d_model)

    print("KERNEL_OK")
</pallas_src>

<mosaic_0001>
module attributes {stable_mosaic.version = 11 : i64} {
  func.func @_ln_matmul_kernel(%arg0: i32, %arg1: memref<8x32xf32, #tpu.memory_space<vmem>>, %arg2: memref<1x32xf32, #tpu.memory_space<vmem>>, %arg3: memref<1x32xf32, #tpu.memory_space<vmem>>, %arg4: memref<32x96xf32, #tpu.memory_space<vmem>>, %arg5: memref<8x96xf32, #tpu.memory_space<vmem>>) attributes {dimension_semantics = [#tpu.dimension_semantics<parallel>], iteration_bounds = array<i64: 2>, scalar_prefetch = 0 : i64, scratch_operands = 0 : i64, tpu.core_type = #tpu.core_type<tc>, window_params = [{transform_indices = @transform_0, window_bounds = array<i64: 8, 32>}, {pipeline_mode = #tpu.pipeline_mode<synchronous>, transform_indices = @transform_1, window_bounds = array<i64: 1, 32>}, {pipeline_mode = #tpu.pipeline_mode<synchronous>, transform_indices = @transform_2, window_bounds = array<i64: 1, 32>}, {pipeline_mode = #tpu.pipeline_mode<synchronous>, transform_indices = @transform_3, window_bounds = array<i64: 32, 96>}, {transform_indices = @transform_4, window_bounds = array<i64: 8, 96>}]} {
    %c0 = arith.constant 0 : index
    %c0_0 = arith.constant 0 : index
    %0 = vector.load %arg1[%c0, %c0_0] : memref<8x32xf32, #tpu.memory_space<vmem>>, vector<8x32xf32>
    %c0_1 = arith.constant 0 : index
    %c0_2 = arith.constant 0 : index
    %1 = vector.load %arg2[%c0_1, %c0_2] : memref<1x32xf32, #tpu.memory_space<vmem>>, vector<1x32xf32>
    %c0_3 = arith.constant 0 : index
    %c0_4 = arith.constant 0 : index
    %2 = vector.load %arg3[%c0_3, %c0_4] : memref<1x32xf32, #tpu.memory_space<vmem>>, vector<1x32xf32>
    %cst = arith.constant dense<0.000000e+00> : vector<8xf32>
    %3 = vector.multi_reduction <add>, %0, %cst [1] : vector<8x32xf32> to vector<8xf32>
    %4 = vector.shape_cast %3 : vector<8xf32> to vector<8x1xf32>
    %cst_5 = arith.constant 3.200000e+01 : f32
    %5 = vector.broadcast %cst_5 : f32 to vector<8x1xf32>
    %6 = arith.divf %4, %5 : vector<8x1xf32>
    %7 = vector.broadcast %6 : vector<8x1xf32> to vector<8x32xf32>
    %8 = arith.subf %0, %7 : vector<8x32xf32>
    %9 = arith.mulf %8, %8 : vector<8x32xf32>
    %cst_6 = arith.constant dense<0.000000e+00> : vector<8xf32>
    %10 = vector.multi_reduction <add>, %9, %cst_6 [1] : vector<8x32xf32> to vector<8xf32>
    %11 = vector.shape_cast %10 : vector<8xf32> to vector<8x1xf32>
    %cst_7 = arith.constant 3.200000e+01 : f32
    %12 = vector.broadcast %cst_7 : f32 to vector<8x1xf32>
    %13 = arith.divf %11, %12 : vector<8x1xf32>
    %cst_8 = arith.constant 9.99999974E-6 : f32
    %14 = vector.broadcast %cst_8 : f32 to vector<8x1xf32>
    %15 = arith.addf %13, %14 : vector<8x1xf32>
    %16 = math.rsqrt %15 : vector<8x1xf32>
    %17 = vector.broadcast %16 : vector<8x1xf32> to vector<8x32xf32>
    %18 = arith.mulf %8, %17 : vector<8x32xf32>
    %19 = vector.broadcast %1 : vector<1x32xf32> to vector<8x32xf32>
    %20 = arith.mulf %18, %19 : vector<8x32xf32>
    %21 = vector.broadcast %2 : vector<1x32xf32> to vector<8x32xf32>
    %22 = arith.addf %20, %21 : vector<8x32xf32>
    %c0_9 = arith.constant 0 : index
    %c0_10 = arith.constant 0 : index
    %23 = vector.load %arg4[%c0_9, %c0_10] : memref<32x96xf32, #tpu.memory_space<vmem>>, vector<32x96xf32>
    %cst_11 = arith.constant dense<0.000000e+00> : vector<8x96xf32>
    %24 = tpu.matmul %22, %23, %cst_11 {dimension_numbers = #tpu.dot_dimension_numbers<[1], [0], [0], [1], [0, 0, 1, 1], [], []>} : vector<8x32xf32>, vector<32x96xf32>, vector<8x96xf32> -> vector<8x96xf32>
    %c0_12 = arith.constant 0 : index
    %c0_13 = arith.constant 0 : index
    %25 = vector.load %arg5[%c0_12, %c0_13] : memref<8x96xf32, #tpu.memory_space<vmem>>, vector<8x96xf32>
    tpu.vector_store %arg5[%c0_12, %c0_13], %24 {strides = array<i32>} : memref<8x96xf32, #tpu.memory_space<vmem>>, vector<8x96xf32>,
    return
  }
  func.func @transform_0(%arg0: i32) -> (i32, i32) {
    %c0_i32 = arith.constant 0 : i32
    %c0_i32_0 = arith.constant 0 : i32
    return %arg0, %c0_i32 : i32, i32
  }
  func.func @transform_1(%arg0: i32) -> (i32, i32) {
    %c0_i32 = arith.constant 0 : i32
    %c0_i32_0 = arith.constant 0 : i32
    %c0_i32_1 = arith.constant 0 : i32
    return %c0_i32, %c0_i32_0 : i32, i32
  }
  func.func @transform_2(%arg0: i32) -> (i32, i32) {
    %c0_i32 = arith.constant 0 : i32
    %c0_i32_0 = arith.constant 0 : i32
    %c0_i32_1 = arith.constant 0 : i32
    return %c0_i32, %c0_i32_0 : i32, i32
  }
  func.func @transform_3(%arg0: i32) -> (i32, i32) {
    %c0_i32 = arith.constant 0 : i32
    %c0_i32_0 = arith.constant 0 : i32
    %c0_i32_1 = arith.constant 0 : i32
    return %c0_i32, %c0_i32_0 : i32, i32
  }
  func.func @transform_4(%arg0: i32) -> (i32, i32) {
    %c0_i32 = arith.constant 0 : i32
    %c0_i32_0 = arith.constant 0 : i32
    return %arg0, %c0_i32 : i32, i32
  }
}

module attributes {stable_mosaic.version = 11 : i64} {
  func.func @_embed_pos_kernel(%arg0: i32, %arg1: memref<16xi32, #tpu.memory_space<smem>>, %arg2: memref<1x1x32xf32, #tpu.memory_space<vmem>>, %arg3: memref<1x1x32xf32, #tpu.memory_space<vmem>>, %arg4: memref<1x1x32xf32, #tpu.memory_space<vmem>>) attributes {dimension_semantics = [#tpu.dimension_semantics<arbitrary>], iteration_bounds = array<i64: 16>, scalar_prefetch = 1 : i64, scratch_operands = 0 : i64, tpu.core_type = #tpu.core_type<tc>, window_params = [{transform_indices = @transform_0, window_bounds = array<i64: 1, 1, 32>}, {transform_indices = @transform_1, window_bounds = array<i64: 1, 1, 32>}, {transform_indices = @transform_2, window_bounds = array<i64: 1, 1, 32>}]} {
    %c0 = arith.constant 0 : index
    %c0_0 = arith.constant 0 : index
    %c0_1 = arith.constant 0 : index
    %0 = vector.load %arg2[%c0, %c0_0, %c0_1] : memref<1x1x32xf32, #tpu.memory_space<vmem>>, vector<1x1x32xf32>
    %c0_2 = arith.constant 0 : index
    %c0_3 = arith.constant 0 : index
    %c0_4 = arith.constant 0 : index
    %1 = vector.load %arg3[%c0_2, %c0_3, %c0_4] : memref<1x1x32xf32, #tpu.memory_space<vmem>>, vector<1x1x32xf32>
    %2 = arith.addf %0, %1 : vector<1x1x32xf32>
    %c0_5 = arith.constant 0 : index
    %c0_6 = arith.constant 0 : index
    %c0_7 = arith.constant 0 : index
    %3 = vector.load %arg4[%c0_5, %c0_6, %c0_7] : memref<1x1x32xf32, #tpu.memory_space<vmem>>, vector<1x1x32xf32>
    tpu.vector_store %arg4[%c0_5, %c0_6, %c0_7], %2 {strides = array<i32>} : memref<1x1x32xf32, #tpu.memory_space<vmem>>, vector<1x1x32xf32>,
    return
  }
  func.func @transform_0(%arg0: i32, %arg1: memref<16xi32, #tpu.memory_space<smem>>) -> (i32, i32, i32) {
    %0 = arith.index_cast %arg0 : i32 to index
    %1 = memref.load %arg1[%0] : memref<16xi32, #tpu.memory_space<smem>>
    %c0_i32 = arith.constant 0 : i32
    %c0_i32_0 = arith.constant 0 : i32
    %c0_i32_1 = arith.constant 0 : i32
    return %1, %c0_i32, %c0_i32_0 : i32, i32, i32
  }
  func.func @transform_1(%arg0: i32, %arg1: memref<16xi32, #tpu.memory_space<smem>>) -> (i32, i32, i32) {
    %c8_i32 = arith.constant 8 : i32
    %c0_i32 = arith.constant 0 : i32
    %0 = arith.cmpi eq, %c8_i32, %c0_i32 : i32
    %c1_i32 = arith.constant 1 : i32
    %1 = arith.select %0, %c1_i32, %c8_i32 : i32
    %2 = arith.remsi %arg0, %1 : i32
    %c0_i32_0 = arith.constant 0 : i32
    %3 = arith.cmpi ne, %2, %c0_i32_0 : i32
    %c0_i32_1 = arith.constant 0 : i32
    %4 = arith.cmpi slt, %2, %c0_i32_1 : i32
    %c0_i32_2 = arith.constant 0 : i32
    %5 = arith.cmpi slt, %1, %c0_i32_2 : i32
    %6 = arith.xori %4, %5 : i1
    %7 = arith.andi %6, %3 : i1
    %8 = arith.addi %2, %1 : i32
    %9 = arith.select %7, %8, %2 : i32
    %c0_i32_3 = arith.constant 0 : i32
    %c0_i32_4 = arith.constant 0 : i32
    %c0_i32_5 = arith.constant 0 : i32
    return %9, %c0_i32_3, %c0_i32_4 : i32, i32, i32
  }
  func.func @transform_2(%arg0: i32, %arg1: memref<16xi32, #tpu.memory_space<smem>>) -> (i32, i32, i32) {
    %c0_i32 = arith.constant 0 : i32
    %c0_i32_0 = arith.constant 0 : i32
    %c0_i32_1 = arith.constant 0 : i32
    return %arg0, %c0_i32, %c0_i32_0 : i32, i32, i32
  }
}

module attributes {stable_mosaic.version = 11 : i64} {
  func.func @_attention_kernel(%arg0: i32, %arg1: i32, %arg2: memref<1x1x8x8xf32, #tpu.memory_space<vmem>>, %arg3: memref<1x1x8x8xf32, #tpu.memory_space<vmem>>, %arg4: memref<1x1x8x8xf32, #tpu.memory_space<vmem>>, %arg5: memref<1x1x8x8xf32, #tpu.memory_space<vmem>>) attributes {dimension_semantics = [#tpu.dimension_semantics<parallel>, #tpu.dimension_semantics<parallel>], iteration_bounds = array<i64: 2, 4>, scalar_prefetch = 0 : i64, scratch_operands = 0 : i64, tpu.core_type = #tpu.core_type<tc>, window_params = [{transform_indices = @transform_0, window_bounds = array<i64: 1, 1, 8, 8>}, {transform_indices = @transform_1, window_bounds = array<i64: 1, 1, 8, 8>}, {transform_indices = @transform_2, window_bounds = array<i64: 1, 1, 8, 8>}, {transform_indices = @transform_3, window_bounds = array<i64: 1, 1, 8, 8>}]} {
    %c0 = arith.constant 0 : index
    %c0_0 = arith.constant 0 : index
    %c0_1 = arith.constant 0 : index
    %c0_2 = arith.constant 0 : index
    %0 = vector.load %arg2[%c0, %c0_0, %c0_1, %c0_2] : memref<1x1x8x8xf32, #tpu.memory_space<vmem>>, vector<1x1x8x8xf32>
    %1 = vector.shape_cast %0 : vector<1x1x8x8xf32> to vector<8x8xf32>
    %c0_3 = arith.constant 0 : index
    %c0_4 = arith.constant 0 : index
    %c0_5 = arith.constant 0 : index
    %c0_6 = arith.constant 0 : index
    %2 = vector.load %arg3[%c0_3, %c0_4, %c0_5, %c0_6] : memref<1x1x8x8xf32, #tpu.memory_space<vmem>>, vector<1x1x8x8xf32>
    %3 = vector.shape_cast %2 : vector<1x1x8x8xf32> to vector<8x8xf32>
    %c0_7 = arith.constant 0 : index
    %c0_8 = arith.constant 0 : index
    %c0_9 = arith.constant 0 : index
    %c0_10 = arith.constant 0 : index
    %4 = vector.load %arg4[%c0_7, %c0_8, %c0_9, %c0_10] : memref<1x1x8x8xf32, #tpu.memory_space<vmem>>, vector<1x1x8x8xf32>
    %5 = vector.shape_cast %4 : vector<1x1x8x8xf32> to vector<8x8xf32>
    %cst = arith.constant dense<0.000000e+00> : vector<8x8xf32>
    %6 = tpu.matmul %1, %3, %cst {dimension_numbers = #tpu.dot_dimension_numbers<[1], [1], [0], [0], [0, 0, 1, 0], [], []>} : vector<8x8xf32>, vector<8x8xf32>, vector<8x8xf32> -> vector<8x8xf32>
    %cst_11 = arith.constant 0.353553385 : f32
    %7 = vector.broadcast %cst_11 : f32 to vector<8x8xf32>
    %8 = arith.mulf %6, %7 : vector<8x8xf32>
    %cst_12 = arith.constant dense<0xFF800000> : vector<8xf32>
    %9 = vector.multi_reduction <maximumf>, %8, %cst_12 [1] : vector<8x8xf32> to vector<8xf32>
    %10 = vector.shape_cast %9 : vector<8xf32> to vector<8x1xf32>
    %11 = vector.broadcast %10 : vector<8x1xf32> to vector<8x8xf32>
    %12 = arith.subf %8, %11 : vector<8x8xf32>
    %13 = math.exp %12 : vector<8x8xf32>
    %cst_13 = arith.constant dense<0.000000e+00> : vector<8xf32>
    %14 = vector.multi_reduction <add>, %13, %cst_13 [1] : vector<8x8xf32> to vector<8xf32>
    %15 = vector.shape_cast %14 : vector<8xf32> to vector<8x1xf32>
    %16 = vector.broadcast %15 : vector<8x1xf32> to vector<8x8xf32>
    %17 = arith.divf %13, %16 : vector<8x8xf32>
    %cst_14 = arith.constant dense<0.000000e+00> : vector<8x8xf32>
    %18 = tpu.matmul %17, %5, %cst_14 {dimension_numbers = #tpu.dot_dimension_numbers<[1], [0], [0], [1], [0, 0, 1, 1], [], []>} : vector<8x8xf32>, vector<8x8xf32>, vector<8x8xf32> -> vector<8x8xf32>
    %c0_15 = arith.constant 0 : index
    %c0_16 = arith.constant 0 : index
    %c0_17 = arith.constant 0 : index
    %c0_18 = arith.constant 0 : index
    %19 = vector.load %arg5[%c0_15, %c0_16, %c0_17, %c0_18] : memref<1x1x8x8xf32, #tpu.memory_space<vmem>>, vector<1x1x8x8xf32>
    %20 = vector.shape_cast %19 : vector<1x1x8x8xf32> to vector<8x8xf32>
    %21 = vector.shape_cast %18 : vector<8x8xf32> to vector<1x1x8x8xf32>
    tpu.vector_store %arg5[%c0_15, %c0_16, %c0_17, %c0_18], %21 {strides = array<i32>} : memref<1x1x8x8xf32, #tpu.memory_space<vmem>>, vector<1x1x8x8xf32>,
    return
  }
  func.func @transform_0(%arg0: i32, %arg1: i32) -> (i32, i32, i32, i32) {
    %c0_i32 = arith.constant 0 : i32
    %c0_i32_0 = arith.constant 0 : i32
    %c0_i32_1 = arith.constant 0 : i32
    return %arg0, %arg1, %c0_i32, %c0_i32_0 : i32, i32, i32, i32
  }
  func.func @transform_1(%arg0: i32, %arg1: i32) -> (i32, i32, i32, i32) {
    %c0_i32 = arith.constant 0 : i32
    %c0_i32_0 = arith.constant 0 : i32
    %c0_i32_1 = arith.constant 0 : i32
    return %arg0, %arg1, %c0_i32, %c0_i32_0 : i32, i32, i32, i32
  }
  func.func @transform_2(%arg0: i32, %arg1: i32) -> (i32, i32, i32, i32) {
    %c0_i32 = arith.constant 0 : i32
    %c0_i32_0 = arith.constant 0 : i32
    %c0_i32_1 = arith.constant 0 : i32
    return %arg0, %arg1, %c0_i32, %c0_i32_0 : i32, i32, i32, i32
  }
  func.func @transform_3(%arg0: i32, %arg1: i32) -> (i32, i32, i32, i32) {
    %c0_i32 = arith.constant 0 : i32
    %c0_i32_0 = arith.constant 0 : i32
    %c0_i32_1 = arith.constant 0 : i32
    return %arg0, %arg1, %c0_i32, %c0_i32_0 : i32, i32, i32, i32
  }
}

module attributes {stable_mosaic.version = 11 : i64} {
  func.func @_matmul_residual_kernel(%arg0: i32, %arg1: memref<8x32xf32, #tpu.memory_space<vmem>>, %arg2: memref<32x32xf32, #tpu.memory_space<vmem>>, %arg3: memref<8x32xf32, #tpu.memory_space<vmem>>, %arg4: memref<8x32xf32, #tpu.memory_space<vmem>>) attributes {dimension_semantics = [#tpu.dimension_semantics<parallel>], iteration_bounds = array<i64: 2>, scalar_prefetch = 0 : i64, scratch_operands = 0 : i64, tpu.core_type = #tpu.core_type<tc>, window_params = [{transform_indices = @transform_0, window_bounds = array<i64: 8, 32>}, {pipeline_mode = #tpu.pipeline_mode<synchronous>, transform_indices = @transform_1, window_bounds = array<i64: 32, 32>}, {transform_indices = @transform_2, window_bounds = array<i64: 8, 32>}, {transform_indices = @transform_3, window_bounds = array<i64: 8, 32>}]} {
    %c0 = arith.constant 0 : index
    %c0_0 = arith.constant 0 : index
    %0 = vector.load %arg3[%c0, %c0_0] : memref<8x32xf32, #tpu.memory_space<vmem>>, vector<8x32xf32>
    %c0_1 = arith.constant 0 : index
    %c0_2 = arith.constant 0 : index
    %1 = vector.load %arg1[%c0_1, %c0_2] : memref<8x32xf32, #tpu.memory_space<vmem>>, vector<8x32xf32>
    %c0_3 = arith.constant 0 : index
    %c0_4 = arith.constant 0 : index
    %2 = vector.load %arg2[%c0_3, %c0_4] : memref<32x32xf32, #tpu.memory_space<vmem>>, vector<32x32xf32>
    %cst = arith.constant dense<0.000000e+00> : vector<8x32xf32>
    %3 = tpu.matmul %1, %2, %cst {dimension_numbers = #tpu.dot_dimension_numbers<[1], [0], [0], [1], [0, 0, 1, 1], [], []>} : vector<8x32xf32>, vector<32x32xf32>, vector<8x32xf32> -> vector<8x32xf32>
    %4 = arith.addf %0, %3 : vector<8x32xf32>
    %c0_5 = arith.constant 0 : index
    %c0_6 = arith.constant 0 : index
    %5 = vector.load %arg4[%c0_5, %c0_6] : memref<8x32xf32, #tpu.memory_space<vmem>>, vector<8x32xf32>
    tpu.vector_store %arg4[%c0_5, %c0_6], %4 {strides = array<i32>} : memref<8x32xf32, #tpu.memory_space<vmem>>, vector<8x32xf32>,
    return
  }
  func.func @transform_0(%arg0: i32) -> (i32, i32) {
    %c0_i32 = arith.constant 0 : i32
    %c0_i32_0 = arith.constant 0 : i32
    return %arg0, %c0_i32 : i32, i32
  }
  func.func @transform_1(%arg0: i32) -> (i32, i32) {
    %c0_i32 = arith.constant 0 : i32
    %c0_i32_0 = arith.constant 0 : i32
    %c0_i32_1 = arith.constant 0 : i32
    return %c0_i32, %c0_i32_0 : i32, i32
  }
  func.func @transform_2(%arg0: i32) -> (i32, i32) {
    %c0_i32 = arith.constant 0 : i32
    %c0_i32_0 = arith.constant 0 : i32
    return %arg0, %c0_i32 : i32, i32
  }
  func.func @transform_3(%arg0: i32) -> (i32, i32) {
    %c0_i32 = arith.constant 0 : i32
    %c0_i32_0 = arith.constant 0 : i32
    return %arg0, %c0_i32 : i32, i32
  }
}

module attributes {stable_mosaic.version = 11 : i64} {
  func.func @_ln_mlp_residual_kernel(%arg0: i32, %arg1: memref<8x32xf32, #tpu.memory_space<vmem>>, %arg2: memref<1x32xf32, #tpu.memory_space<vmem>>, %arg3: memref<1x32xf32, #tpu.memory_space<vmem>>, %arg4: memref<32x128xf32, #tpu.memory_space<vmem>>, %arg5: memref<1x128xf32, #tpu.memory_space<vmem>>, %arg6: memref<128x32xf32, #tpu.memory_space<vmem>>, %arg7: memref<1x32xf32, #tpu.memory_space<vmem>>, %arg8: memref<8x32xf32, #tpu.memory_space<vmem>>) attributes {dimension_semantics = [#tpu.dimension_semantics<parallel>], iteration_bounds = array<i64: 2>, scalar_prefetch = 0 : i64, scratch_operands = 0 : i64, tpu.core_type = #tpu.core_type<tc>, window_params = [{transform_indices = @transform_0, window_bounds = array<i64: 8, 32>}, {pipeline_mode = #tpu.pipeline_mode<synchronous>, transform_indices = @transform_1, window_bounds = array<i64: 1, 32>}, {pipeline_mode = #tpu.pipeline_mode<synchronous>, transform_indices = @transform_2, window_bounds = array<i64: 1, 32>}, {pipeline_mode = #tpu.pipeline_mode<synchronous>, transform_indices = @transform_3, window_bounds = array<i64: 32, 128>}, {pipeline_mode = #tpu.pipeline_mode<synchronous>, transform_indices = @transform_4, window_bounds = array<i64: 1, 128>}, {pipeline_mode = #tpu.pipeline_mode<synchronous>, transform_indices = @transform_5, window_bounds = array<i64: 128, 32>}, {pipeline_mode = #tpu.pipeline_mode<synchronous>, transform_indices = @transform_6, window_bounds = array<i64: 1, 32>}, {transform_indices = @transform_7, window_bounds = array<i64: 8, 32>}]} {
    %c0 = arith.constant 0 : index
    %c0_0 = arith.constant 0 : index
    %0 = vector.load %arg1[%c0, %c0_0] : memref<8x32xf32, #tpu.memory_space<vmem>>, vector<8x32xf32>
    %c0_1 = arith.constant 0 : index
    %c0_2 = arith.constant 0 : index
    %1 = vector.load %arg2[%c0_1, %c0_2] : memref<1x32xf32, #tpu.memory_space<vmem>>, vector<1x32xf32>
    %c0_3 = arith.constant 0 : index
    %c0_4 = arith.constant 0 : index
    %2 = vector.load %arg3[%c0_3, %c0_4] : memref<1x32xf32, #tpu.memory_space<vmem>>, vector<1x32xf32>
    %cst = arith.constant dense<0.000000e+00> : vector<8xf32>
    %3 = vector.multi_reduction <add>, %0, %cst [1] : vector<8x32xf32> to vector<8xf32>
    %4 = vector.shape_cast %3 : vector<8xf32> to vector<8x1xf32>
    %cst_5 = arith.constant 3.200000e+01 : f32
    %5 = vector.broadcast %cst_5 : f32 to vector<8x1xf32>
    %6 = arith.divf %4, %5 : vector<8x1xf32>
    %7 = vector.broadcast %6 : vector<8x1xf32> to vector<8x32xf32>
    %8 = arith.subf %0, %7 : vector<8x32xf32>
    %9 = arith.mulf %8, %8 : vector<8x32xf32>
    %cst_6 = arith.constant dense<0.000000e+00> : vector<8xf32>
    %10 = vector.multi_reduction <add>, %9, %cst_6 [1] : vector<8x32xf32> to vector<8xf32>
    %11 = vector.shape_cast %10 : vector<8xf32> to vector<8x1xf32>
    %cst_7 = arith.constant 3.200000e+01 : f32
    %12 = vector.broadcast %cst_7 : f32 to vector<8x1xf32>
    %13 = arith.divf %11, %12 : vector<8x1xf32>
    %cst_8 = arith.constant 9.99999974E-6 : f32
    %14 = vector.broadcast %cst_8 : f32 to vector<8x1xf32>
    %15 = arith.addf %13, %14 : vector<8x1xf32>
    %16 = math.rsqrt %15 : vector<8x1xf32>
    %17 = vector.broadcast %16 : vector<8x1xf32> to vector<8x32xf32>
    %18 = arith.mulf %8, %17 : vector<8x32xf32>
    %19 = vector.broadcast %1 : vector<1x32xf32> to vector<8x32xf32>
    %20 = arith.mulf %18, %19 : vector<8x32xf32>
    %21 = vector.broadcast %2 : vector<1x32xf32> to vector<8x32xf32>
    %22 = arith.addf %20, %21 : vector<8x32xf32>
    %c0_9 = arith.constant 0 : index
    %c0_10 = arith.constant 0 : index
    %23 = vector.load %arg4[%c0_9, %c0_10] : memref<32x128xf32, #tpu.memory_space<vmem>>, vector<32x128xf32>
    %cst_11 = arith.constant dense<0.000000e+00> : vector<8x128xf32>
    %24 = tpu.matmul %22, %23, %cst_11 {dimension_numbers = #tpu.dot_dimension_numbers<[1], [0], [0], [1], [0, 0, 1, 1], [], []>} : vector<8x32xf32>, vector<32x128xf32>, vector<8x128xf32> -> vector<8x128xf32>
    %c0_12 = arith.constant 0 : index
    %c0_13 = arith.constant 0 : index
    %25 = vector.load %arg5[%c0_12, %c0_13] : memref<1x128xf32, #tpu.memory_space<vmem>>, vector<1x128xf32>
    %26 = vector.broadcast %25 : vector<1x128xf32> to vector<8x128xf32>
    %27 = arith.addf %24, %26 : vector<8x128xf32>
    %cst_14 = arith.constant 5.000000e-01 : f32
    %28 = vector.broadcast %cst_14 : f32 to vector<8x128xf32>
    %29 = arith.mulf %28, %27 : vector<8x128xf32>
    %cst_15 = arith.constant 4.471500e-02 : f32
    %30 = vector.broadcast %cst_15 : f32 to vector<8x128xf32>
    %31 = arith.mulf %30, %27 : vector<8x128xf32>
    %32 = arith.mulf %31, %27 : vector<8x128xf32>
    %33 = arith.mulf %32, %27 : vector<8x128xf32>
    %34 = arith.addf %27, %33 : vector<8x128xf32>
    %cst_16 = arith.constant 0.797884583 : f32
    %35 = vector.broadcast %cst_16 : f32 to vector<8x128xf32>
    %36 = arith.mulf %35, %34 : vector<8x128xf32>
    %37 = math.tanh %36 : vector<8x128xf32>
    %cst_17 = arith.constant 1.000000e+00 : f32
    %38 = vector.broadcast %cst_17 : f32 to vector<8x128xf32>
    %39 = arith.addf %38, %37 : vector<8x128xf32>
    %40 = arith.mulf %29, %39 : vector<8x128xf32>
    %c0_18 = arith.constant 0 : index
    %c0_19 = arith.constant 0 : index
    %41 = vector.load %arg6[%c0_18, %c0_19] : memref<128x32xf32, #tpu.memory_space<vmem>>, vector<128x32xf32>
    %cst_20 = arith.constant dense<0.000000e+00> : vector<8x32xf32>
    %42 = tpu.matmul %40, %41, %cst_20 {dimension_numbers = #tpu.dot_dimension_numbers<[1], [0], [0], [1], [0, 0, 1, 1], [], []>} : vector<8x128xf32>, vector<128x32xf32>, vector<8x32xf32> -> vector<8x32xf32>
    %c0_21 = arith.constant 0 : index
    %c0_22 = arith.constant 0 : index
    %43 = vector.load %arg7[%c0_21, %c0_22] : memref<1x32xf32, #tpu.memory_space<vmem>>, vector<1x32xf32>
    %44 = vector.broadcast %43 : vector<1x32xf32> to vector<8x32xf32>
    %45 = arith.addf %42, %44 : vector<8x32xf32>
    %46 = arith.addf %0, %45 : vector<8x32xf32>
    %c0_23 = arith.constant 0 : index
    %c0_24 = arith.constant 0 : index
    %47 = vector.load %arg8[%c0_23, %c0_24] : memref<8x32xf32, #tpu.memory_space<vmem>>, vector<8x32xf32>
    tpu.vector_store %arg8[%c0_23, %c0_24], %46 {strides = array<i32>} : memref<8x32xf32, #tpu.memory_space<vmem>>, vector<8x32xf32>,
    return
  }
  func.func @transform_0(%arg0: i32) -> (i32, i32) {
    %c0_i32 = arith.constant 0 : i32
    %c0_i32_0 = arith.constant 0 : i32
    return %arg0, %c0_i32 : i32, i32
  }
  func.func @transform_1(%arg0: i32) -> (i32, i32) {
    %c0_i32 = arith.constant 0 : i32
    %c0_i32_0 = arith.constant 0 : i32
    %c0_i32_1 = arith.constant 0 : i32
    return %c0_i32, %c0_i32_0 : i32, i32
  }
  func.func @transform_2(%arg0: i32) -> (i32, i32) {
    %c0_i32 = arith.constant 0 : i32
    %c0_i32_0 = arith.constant 0 : i32
    %c0_i32_1 = arith.constant 0 : i32
    return %c0_i32, %c0_i32_0 : i32, i32
  }
  func.func @transform_3(%arg0: i32) -> (i32, i32) {
    %c0_i32 = arith.constant 0 : i32
    %c0_i32_0 = arith.constant 0 : i32
    %c0_i32_1 = arith.constant 0 : i32
    return %c0_i32, %c0_i32_0 : i32, i32
  }
  func.func @transform_4(%arg0: i32) -> (i32, i32) {
    %c0_i32 = arith.constant 0 : i32
    %c0_i32_0 = arith.constant 0 : i32
    %c0_i32_1 = arith.constant 0 : i32
    return %c0_i32, %c0_i32_0 : i32, i32
  }
  func.func @transform_5(%arg0: i32) -> (i32, i32) {
    %c0_i32 = arith.constant 0 : i32
    %c0_i32_0 = arith.constant 0 : i32
    %c0_i32_1 = arith.constant 0 : i32
    return %c0_i32, %c0_i32_0 : i32, i32
  }
  func.func @transform_6(%arg0: i32) -> (i32, i32) {
    %c0_i32 = arith.constant 0 : i32
    %c0_i32_0 = arith.constant 0 : i32
    %c0_i32_1 = arith.constant 0 : i32
    return %c0_i32, %c0_i32_0 : i32, i32
  }
  func.func @transform_7(%arg0: i32) -> (i32, i32) {
    %c0_i32 = arith.constant 0 : i32
    %c0_i32_0 = arith.constant 0 : i32
    return %arg0, %c0_i32 : i32, i32
  }
}

module attributes {stable_mosaic.version = 11 : i64} {
  func.func @_select_l2norm_kernel(%arg0: i32, %arg1: memref<2xi32, #tpu.memory_space<smem>>, %arg2: memref<1x1x32xf32, #tpu.memory_space<vmem>>, %arg3: memref<1x1x32xf32, #tpu.memory_space<vmem>>) attributes {dimension_semantics = [#tpu.dimension_semantics<arbitrary>], iteration_bounds = array<i64: 2>, scalar_prefetch = 1 : i64, scratch_operands = 0 : i64, tpu.core_type = #tpu.core_type<tc>, window_params = [{transform_indices = @transform_0, window_bounds = array<i64: 1, 1, 32>}, {transform_indices = @transform_1, window_bounds = array<i64: 1, 1, 32>}]} {
    %c0 = arith.constant 0 : index
    %c0_0 = arith.constant 0 : index
    %c0_1 = arith.constant 0 : index
    %0 = vector.load %arg2[%c0, %c0_0, %c0_1] : memref<1x1x32xf32, #tpu.memory_space<vmem>>, vector<1x1x32xf32>
    %1 = arith.mulf %0, %0 : vector<1x1x32xf32>
    %cst = arith.constant dense<0.000000e+00> : vector<1x1xf32>
    %2 = vector.multi_reduction <add>, %1, %cst [2] : vector<1x1x32xf32> to vector<1x1xf32>
    %3 = vector.shape_cast %2 : vector<1x1xf32> to vector<1x1x1xf32>
    %4 = math.sqrt %3 : vector<1x1x1xf32>
    %5 = vector.broadcast %4 : vector<1x1x1xf32> to vector<1x1x32xf32>
    %6 = arith.divf %0, %5 : vector<1x1x32xf32>
    %c0_2 = arith.constant 0 : index
    %c0_3 = arith.constant 0 : index
    %c0_4 = arith.constant 0 : index
    %7 = vector.load %arg3[%c0_2, %c0_3, %c0_4] : memref<1x1x32xf32, #tpu.memory_space<vmem>>, vector<1x1x32xf32>
    tpu.vector_store %arg3[%c0_2, %c0_3, %c0_4], %6 {strides = array<i32>} : memref<1x1x32xf32, #tpu.memory_space<vmem>>, vector<1x1x32xf32>,
    return
  }
  func.func @transform_0(%arg0: i32, %arg1: memref<2xi32, #tpu.memory_space<smem>>) -> (i32, i32, i32) {
    %c8_i32 = arith.constant 8 : i32
    %0 = arith.muli %arg0, %c8_i32 : i32
    %1 = arith.index_cast %arg0 : i32 to index
    %2 = memref.load %arg1[%1] : memref<2xi32, #tpu.memory_space<smem>>
    %3 = arith.addi %0, %2 : i32
    %c0_i32 = arith.constant 0 : i32
    %c0_i32_0 = arith.constant 0 : i32
    %c0_i32_1 = arith.constant 0 : i32
    return %3, %c0_i32, %c0_i32_0 : i32, i32, i32
  }
  func.func @transform_1(%arg0: i32, %arg1: memref<2xi32, #tpu.memory_space<smem>>) -> (i32, i32, i32) {
    %c0_i32 = arith.constant 0 : i32
    %c0_i32_0 = arith.constant 0 : i32
    %c0_i32_1 = arith.constant 0 : i32
    return %arg0, %c0_i32, %c0_i32_0 : i32, i32, i32
  }
}

</mosaic_0001>

<bundles_post_ra>
// kernel: text_encoder_forward.11
= control target key start
LH: loop header
LB: loop body
LE: loop exit
PB: predicated region body
PF: predicated region fallthrough
CT: control target
= control target key end

     0   :  { %s432_s15 = smov 0   ;;  %s477_s0 = inlined_call_operand.vmem [shape: f32[16,32], index: 0, kind: input, shape index: {}]   ;;  %s478_s1 = inlined_call_operand.vmem [shape: f32[1,32], index: 1, kind: input, shape index: {}]   ;;  %s479_s2 = inlined_call_operand.vmem [shape: f32[1,32], index: 2, kind: input, shape index: {}]   ;;  %s480_s3 = inlined_call_operand.vmem [shape: f32[32,96], index: 3, kind: input, shape index: {}]   ;;  %s481_s4 = inlined_call_operand.vmem [shape: f32[16,96], index: 4, kind: output, shape index: {}]  }
   0x1 LB: > { %s357_s16 = sadd.s32 4294967295, %s403_s15   ;;  %p361_p0 = scmp.ge.s32.totalorder %s403_s15, 1  ;;  %s403_s15 = sphi %s432_s15, %s14_s15  }
   0x2   : > { %p161_p1 = scmp.lt.s32.totalorder %s403_s15, 3 }
   0x4   : > { %p162_p2 = pnand %p361_p0, %p161_p1 }
   0x5   : > { %p185_p3 = scmp.lt.s32.totalorder (!%p162_p2), %s357_s16, 1 }
   0x6   : > { %165 = sbr.rel (%p162_p2) target bundleno = 518 (0x206), region = 36 }
   0xb   : > { %s483_s16 = smov (!%p185_p3, %s357_s16), 1  ;;  %vm196_vm0 = vcmask 261120   ;;  %v228_v7 = vld [vmem:[%s480_s3 + $0x18] sm:$0xff]  ;;  %v405_v8 = vmov 0.0   ;;  %v227_v9 = vld [vmem:[%s480_s3 + $0x10] sm:$0xff]  ;;  %vm406_vm1 = vmmov 0  }
   0xc   : > { %s362_s17 = sshll.u32 %s483_s16, 3  ;;  %374 = vmatprep.subr.mxu0 %v405_v8  ;;  %382 = vmatprep.mubr.msk.f32.mxu0 %vm406_vm1, %v405_v8  ;;  %v226_v10 = vld [vmem:[%s480_s3 + $0x8] sm:$0xff]  ;;  %v225_v11 = vld [vmem:[%s480_s3] sm:$0xff]  ;;  %vm302_vm2 = vcmask 785408  }
   0xd   : > { %s188_s20 = scalar_lea.vmem %s477_s0, %s362_s17  ;;  %375 = vmatpush3.msra.mxu0 %v228_v7  ;;  %v364_v16 = vld [vmem:[%s478_s1] ss:$0 sm:$0xff]  ;;  %s192_s9 = scalar_lea.vmem %s481_s4, %s362_s17 }
   0xe   : > { %v193_v0 = vld [vmem:[%s188_s20] sm:$0xff]  ;;  %376 = vmatprep.subr.mxu0 %v405_v8 }
   0xf   : > { %v197_v1 = vsel %vm196_vm0, %v193_v0, 0.0  ;;  %377 = vmatpush3.msra.mxu0 %v227_v9  ;;  %v365_v18 = vld [vmem:[%s479_s2] ss:$0 sm:$0xff] }
  0x10   : > { %198 = vadd.xlane.f32.xlu0 %v197_v1  ;;  %378 = vmatprep.subr.mxu0 %v405_v8 }
  0x11   : > { %379 = vmatpush3.msra.mxu0 %v226_v10 }
  0x12   : > { %380 = vmatprep.subr.mxu0 %v405_v8 }
  0x13   : > { %381 = vmatpush3.msra.mxu0 %v225_v11 }
  0x99   : > { %v199_v2 = vpop.xlane.xlu0 %198 }
  0x9a   : > { %v201_v3 = vmul.f32 0.03125, %v199_v2 }
  0x9c   : > { %v202_v4 = vsub.f32 %v193_v0, %v201_v3 }
  0x9e   : > { %v203_v5 = vmul.f32 %v202_v4, %v202_v4 }
  0xa0   : > { %v204_v6 = vsel %vm196_vm0, %v203_v5, 0.0 }
  0xa1   : > { %205 = vadd.xlane.f32.xlu0 %v204_v6 }
 0x12a   : > { %v206_v12 = vpop.xlane.xlu0 %205 }
 0x12b   : > { %v207_v13 = vmul.f32 0.03125, %v206_v12 }
 0x12d   : > { %v208_v14 = vadd.f32 1e-05, %v207_v13 }
 0x12f   : > { %395 = vrsqrt.f32 %v208_v14 }
 0x13c   : > { %v396_v15 = vpop.eup %395 }
 0x13d   : > { %v210_v17 = vmul.f32 %v396_v15, %v202_v4 }
 0x13f   : > { %v217_v19 = vmul.f32 %v364_v16, %v210_v17 }
 0x141   : > { %v224_v20 = vadd.f32 %v365_v18, %v217_v19 }
 0x143   : > { %383 = vmatmul.mubr.msk.f32.vlgmr.msra.gmra.mxu0 %vm196_vm0, %v224_v20 }
 0x203   : > { %v298_v21 = vpop.f32.mrf.mxu0 }
 0x204   : > { %303 = vst.msk [vmem:[%s192_s9] sm:$0xff] %vm302_vm2, %v298_v21 }
 0x205   : > { %v384_v22 = vpop.f32.mrf.mxu0 }
 0x206 PF: > { %s14_s15 = sadd.s32 1, %s403_s15  }
 0x207   : > { %p11_p4 = scmp.ge.s32.totalorder %s14_s15, 4  }
 0x209   :  { %13 = sbr.rel (!%p11_p4) target bundleno = 1 (0x1), region = 66 }

// kernel: text_encoder_forward.10
= control target key start
LH: loop header
LB: loop body
LE: loop exit
PB: predicated region body
PF: predicated region fallthrough
CT: control target
= control target key end

     0   :  { %s395_s0 = inlined_call_operand.vmem [shape: s32[16], index: 0, kind: input, shape index: {}]   ;;  %s396_s1 = inlined_call_operand.vmem [shape: f32[50,1,32], index: 1, kind: input, shape index: {}]   ;;  %s397_s2 = inlined_call_operand.vmem [shape: f32[8,1,32], index: 2, kind: input, shape index: {}]   ;;  %s398_s3 = inlined_call_operand.vmem [shape: f32[16,1,32], index: 3, kind: output, shape index: {}]  }
   0x1   :  { %s8_s14 = sshll.u32 %s395_s0, 4  ;;  %s9_s14 = int_to_ptr.vmem [resolvable:$true] %s8_s14 }
   0x2   :  { %s329_s15 = scalar_lea.vmem %s9_s14, 16  ;;  %p334_p1 = scmp.lt.s32.totalorder %s9_s14, %s9_s14 }
   0x3   :  { %p330_p0 = scmp.ne.s32.totalorder %s9_s14, %s329_s15  ;;  %p335_p2 = scmp.lt.s32.totalorder %s329_s15, %s329_s15 }
   0x5   :  { %p336_p3 = por %p335_p2, %p334_p1 }
   0x7   :  { %p337_p4 = pnand %p336_p3, %p330_p0 }
   0x9   :  { %340 = shalt.err (!%p337_p4)  }
   0xa   :  { %s351_s16 = smov [#allocation3]  }
   0xb   :  { %11 = dma.vmem_to_smem %s9_s14, 16, %s351_s16, [#allocation2] }
   0xc   :  { %345 = dma.done.wait [#allocation2], 16 }
   0xd   :  { %346 = vsyncadd [#allocation2], 4294967280 }
   0xe   :  { %13 = sfence }
   0xf   :  { %s375_s17 = smov 0  }
  0x10 LB: > { %s304_s0 = sadd.s32 4294967295, %s349_s17   ;;  %p314_p5 = scmp.ge.s32.totalorder %s349_s17, 1  ;;  %s349_s17 = sphi %s375_s17, %s19_s17  }
  0x11   : > { %p177_p6 = scmp.lt.s32.totalorder %s349_s17, 17 }
  0x13   : > { %p178_p7 = pnand %p314_p5, %p177_p6 }
  0x14   : > { %s211_s18 = sld [smem:[#allocation3 + %s304_s0]] (!%p178_p7)  ;;  %p216_p8 = scmp.lt.s32.totalorder (!%p178_p7), %s304_s0, 0 }
  0x15   : > { %181 = sbr.rel (%p178_p7) target bundleno = 38 (0x26), region = 28  ;;  %s217_s19 = ssub.s32 (!%p178_p7), 0, %s304_s0 }
  0x16   : > { %s315_s20 = smin.u32 (!%p178_p7), %s304_s0, %s217_s19  ;;  %p243_p10 = scmp.lt.s32.totalorder (!%p178_p7), %s304_s0, 15 }
  0x17   : > { %s219_s21 = sand.u32 (!%p178_p7), 7, %s315_s20  }
  0x18   : > { %s220_s22 = ssub.s32 (!%p178_p7), 0, %s219_s21 }
  0x1a   : > { %s400_s22 = smov (!%p216_p8, %s220_s22), %s219_s21  ;;  %p212_p9 = scmp.lt.s32.totalorder %s211_s18, 49  ;;  %vm249_vm0 = vcmask 253952  }
  0x1b   : > { %p317_p11 = scmp.lt.s32.totalorder %s400_s22, 0  ;;  %s226_s23 = sadd.s32 8, %s400_s22 }
  0x1c   : > { %s402_s18 = smov (!%p212_p9, %s211_s18), 49  ;;  %s406_s0 = smov (!%p243_p10, %s304_s0), 15 }
  0x1d   : > { %s404_s23 = smov (!%p317_p11, %s226_s23), %s400_s22  ;;  %s214_s26 = scalar_lea.vmem %s396_s1, %s402_s18 }
  0x1e   : > { %p228_p12 = scmp.lt.s32.totalorder %s404_s23, 7  ;;  %v246_v0 = vld [vmem:[%s214_s26] sm:$0x1]  ;;  %s245_s5 = scalar_lea.vmem %s398_s3, %s406_s0 }
  0x20   : > { %s408_s23 = smov (!%p228_p12, %s404_s23), 7 }
  0x21   : > { %s230_s29 = scalar_lea.vmem %s397_s2, %s408_s23 }
  0x22   : > { %v247_v1 = vld [vmem:[%s230_s29] sm:$0x1] }
  0x23   : > { %v248_v2 = vadd.f32 %v247_v1, %v246_v0 }
  0x25   : > { %250 = vst.msk [vmem:[%s245_s5] sm:$0x1] %vm249_vm0, %v248_v2 }
  0x26 PF: > { %s19_s17 = sadd.s32 1, %s349_s17  }
  0x27   : > { %p16_p13 = scmp.ge.s32.totalorder %s19_s17, 18  }
  0x29   :  { %18 = sbr.rel (!%p16_p13) target bundleno = 16 (0x10), region = 61 }

// kernel: text_encoder_forward.12
= control target key start
LH: loop header
LB: loop body
LE: loop exit
PB: predicated region body
PF: predicated region fallthrough
CT: control target
= control target key end

     0   :  { %s692_s12 = smov 0   ;;  %s694_s13 = smov 0   ;;  %s761_s0 = inlined_call_operand.vmem [shape: f32[2,4,8,8], index: 0, kind: input, shape index: {}]   ;;  %s762_s1 = inlined_call_operand.vmem [shape: f32[2,4,8,8], index: 1, kind: input, shape index: {}]   ;;  %s763_s2 = inlined_call_operand.vmem [shape: f32[2,4,8,8], index: 2, kind: input, shape index: {}]   ;;  %s764_s3 = inlined_call_operand.vmem [shape: f32[2,4,8,8], index: 3, kind: output, shape index: {}]  }
   0x1   :  { %s696_s14 = smov 0   ;;  %s698_s15 = smov 0  }
   0x2   :  { %s700_s16 = smov 0  }
   0x3 LB: > { %s22_s17 = sadd.s32 1, %s660_s14  ;;  %s25_s18 = sadd.s32 1, %s664_s15  ;;  %s668_s16 = sphi %s700_s16, %s13_s16   ;;  %s664_s15 = sphi %s698_s15, %s768_s15   ;;  %s660_s14 = sphi %s696_s14, %s767_s14   ;;  %s656_s13 = sphi %s694_s13, %s766_s13   ;;  %s652_s12 = sphi %s692_s12, %s765_s12  }
   0x4   : > { %p23_p0 = scmp.ge.s32.totalorder %s22_s17, 4  ;;  %p556_p1 = scmp.ge.s32.totalorder %s668_s16, 1 }
   0x5   : > { %p186_p2 = scmp.lt.s32.totalorder %s668_s16, 9 }
   0x6   : > { %s770_s17 = smov (%p23_p0, %s22_s17), 0  ;;  %s772_s18 = smov (!%p23_p0, %s25_s18), %s664_s15 }
   0x7   : > { %p187_p3 = pnand %p556_p1, %p186_p2  ;;  %p27_p4 = scmp.ge.s32.totalorder %s772_s18, 2 }
   0x8   : > { %p232_p5 = scmp.lt.s32.totalorder (!%p187_p3), %s656_s13, 1  ;;  %p234_p6 = scmp.lt.s32.totalorder (!%p187_p3), %s652_s12, 3 }
   0x9   : > { %s774_s18 = smov (%p27_p4, %s772_s18), 0  ;;  %190 = sbr.rel (%p187_p3) target bundleno = 725 (0x2d5), region = 32 }
   0xe   : > { %v670_v0 = vmov 0.0   ;;  %vm671_vm0 = vmmov 0   ;;  %s776_s13 = smov (!%p232_p5, %s656_s13), 1  ;;  %s778_s12 = smov (!%p234_p6, %s652_s12), 3  ;;  %vm267_vm1 = vcmask 64512  }
   0xf   : > { %574 = vmatprep.subr.mxu0 %v670_v0  ;;  %576 = vmatprep.mubr.msk.f32.mxu0 %vm671_vm0, %v670_v0  ;;  %s557_s19 = sshll.u32 %s776_s13, 2 }
  0x10   : > { %579 = vmatprep.subr.mxu1 %v670_v0  ;;  %581 = vmatprep.mubr.msk.f32.mxu1 %vm671_vm0, %v670_v0  ;;  %s237_s20 = sadd.s32 %s557_s19, %s778_s12 }
  0x11   : > { %s722_s21 = sshll.u32 %s237_s20, 3 }
  0x12   : > { %s247_s24 = scalar_lea.vmem %s762_s1, %s722_s21  ;;  %s239_s27 = scalar_lea.vmem %s761_s0, %s722_s21 }
  0x13   : > { %v265_v1 = vld [vmem:[%s247_s24] sm:$0xff]  ;;  %s255_s30 = scalar_lea.vmem %s763_s2, %s722_s21  ;;  %s263_s6 = scalar_lea.vmem %s764_s3, %s722_s21 }
  0x14   : > { %575 = vmatpush3.xpose.msk.msra.mxu0 %vm267_vm1, %v265_v1  ;;  %v264_v2 = vld [vmem:[%s239_s27] sm:$0xff] }
  0x15   : > { %v266_v12 = vld [vmem:[%s255_s30] sm:$0xff] }
  0x16   : > { %580 = vmatpush3.msra.mxu1 %v266_v12 }
  0x17   : > { %577 = vmatmul.mubr.msk.f32.vlgmr.msra.gmra.mxu0 %vm267_vm1, %v264_v2 }
  0xd7   : > { %v340_v3 = vpop.f32.mrf.mxu0 }
  0xd8   : > { %v344_v4 = vmul.f32 0.35355338, %v340_v3 }
  0xd9   : > { %v578_v5 = vpop.f32.mrf.mxu0 }
  0xda   : > { %v345_v6 = vsel %vm267_vm1, %v344_v4, -inf }
  0xdb   : > { %346 = vmax.xlane.f32.xlu0 %v345_v6 }
 0x164   : > { %v347_v7 = vpop.xlane.xlu0 %346 }
 0x165   : > { %v348_v8 = vsub.f32 %v344_v4, %v347_v7 }
 0x167   : > { %v349_v9 = vmul.f32 1.442695, %v348_v8 }
 0x169   : > { %626 = vpow2.f32 %v349_v9 }
 0x176   : > { %v627_v10 = vpop.eup %626 }
 0x177   : > { %v351_v11 = vsel %vm267_vm1, %v627_v10, 0.0 }
 0x178   : > { %352 = vadd.xlane.f32.xlu0 %v351_v11 }
 0x201   : > { %v353_v13 = vpop.xlane.xlu0 %352 }
 0x202   : > { %628 = vrcp.f32 %v353_v13 }
 0x20f   : > { %v629_v14 = vpop.eup %628 }
 0x210   : > { %v355_v15 = vmul.f32 %v629_v14, %v627_v10 }
 0x212   : > { %582 = vmatmul.mubr.msk.f32.vlgmr.msra.gmra.mxu1 %vm267_vm1, %v355_v15 }
 0x2d2   : > { %v425_v16 = vpop.f32.mrf.mxu1 }
 0x2d3   : > { %429 = vst.msk [vmem:[%s263_s6] sm:$0xff] %vm267_vm1, %v425_v16 }
 0x2d4   : > { %v583_v17 = vpop.f32.mrf.mxu1 }
 0x2d5 PF: > { %s13_s16 = sadd.s32 1, %s668_s16   ;;  %s765_s12 = smov %s660_s14 }
 0x2d6   : > { %p10_p7 = scmp.ge.s32.totalorder %s13_s16, 10   ;;  %s766_s13 = smov %s664_s15 }
 0x2d7   : > { %s767_s14 = smov %s770_s17  ;;  %s768_s15 = smov %s774_s18 }
 0x2d8   :  { %12 = sbr.rel (!%p10_p7) target bundleno = 3 (0x3), region = 68 }

// kernel: text_encoder_forward.13
= control target key start
LH: loop header
LB: loop body
LE: loop exit
PB: predicated region body
PF: predicated region fallthrough
CT: control target
= control target key end

     0   :  { %s397_s12 = smov 0   ;;  %s429_s0 = inlined_call_operand.vmem [shape: f32[16,32], index: 0, kind: input, shape index: {}]   ;;  %s430_s1 = inlined_call_operand.vmem [shape: f32[32,32], index: 1, kind: input, shape index: {}]   ;;  %s431_s2 = inlined_call_operand.vmem [shape: f32[16,32], index: 2, kind: input, shape index: {}]   ;;  %s432_s3 = inlined_call_operand.vmem [shape: f32[16,32], index: 3, kind: output, shape index: {}]  }
   0x1 LB: > { %s330_s13 = sadd.s32 4294967295, %s373_s12   ;;  %p334_p0 = scmp.ge.s32.totalorder %s373_s12, 1  ;;  %s373_s12 = sphi %s397_s12, %s13_s12  }
   0x2   : > { %p145_p1 = scmp.lt.s32.totalorder %s373_s12, 3 }
   0x4   : > { %p146_p2 = pnand %p334_p0, %p145_p1 }
   0x5   : > { %p171_p3 = scmp.lt.s32.totalorder (!%p146_p2), %s330_s13, 1 }
   0x6   : > { %149 = sbr.rel (%p146_p2) target bundleno = 216 (0xd8), region = 32 }
   0xb   : > { %v188_v0 = vld [vmem:[%s430_s1 + $0x18] sm:$0xff]  ;;  %v375_v1 = vmov 0.0   ;;  %v187_v2 = vld [vmem:[%s430_s1 + $0x10] sm:$0xff]  ;;  %vm376_vm0 = vmmov 0   ;;  %s434_s13 = smov (!%p171_p3, %s330_s13), 1  ;;  %v186_v3 = vld [vmem:[%s430_s1 + $0x8] sm:$0xff] }
   0xc   : > { %346 = vmatprep.subr.mxu0 %v375_v1  ;;  %354 = vmatprep.mubr.msk.f32.mxu0 %vm376_vm0, %v375_v1  ;;  %s335_s20 = sshll.u32 %s434_s13, 3  ;;  %v185_v4 = vld [vmem:[%s430_s1] sm:$0xff]  ;;  %vm189_vm1 = vcmask 261120  }
   0xd   : > { %347 = vmatpush3.msra.mxu0 %v188_v0  ;;  %s174_s25 = scalar_lea.vmem %s429_s0, %s335_s20  ;;  %s178_s28 = scalar_lea.vmem %s431_s2, %s335_s20 }
   0xe   : > { %348 = vmatprep.subr.mxu0 %v375_v1  ;;  %v184_v5 = vld [vmem:[%s174_s25] sm:$0xff]  ;;  %s182_s4 = scalar_lea.vmem %s432_s3, %s335_s20 }
   0xf   : > { %349 = vmatpush3.msra.mxu0 %v187_v2  ;;  %v183_v6 = vld [vmem:[%s178_s28] sm:$0xff] }
  0x10   : > { %350 = vmatprep.subr.mxu0 %v375_v1 }
  0x11   : > { %351 = vmatpush3.msra.mxu0 %v186_v3 }
  0x12   : > { %352 = vmatprep.subr.mxu0 %v375_v1 }
  0x13   : > { %353 = vmatpush3.msra.mxu0 %v185_v4 }
  0x14   : > { %355 = vmatmul.mubr.msk.f32.vlgmr.msra.gmra.mxu0 %vm189_vm1, %v184_v5 }
  0xd4   : > { %v259_v7 = vpop.f32.mrf.mxu0 }
  0xd5   : > { %v263_v8 = vadd.f32 %v259_v7, %v183_v6 }
  0xd6   : > { %v356_v9 = vpop.f32.mrf.mxu0 }
  0xd7   : > { %264 = vst.msk [vmem:[%s182_s4] sm:$0xff] %vm189_vm1, %v263_v8 }
  0xd8 PF: > { %s13_s12 = sadd.s32 1, %s373_s12  }
  0xd9   : > { %p10_p4 = scmp.ge.s32.totalorder %s13_s12, 4  }
  0xdb   :  { %12 = sbr.rel (!%p10_p4) target bundleno = 1 (0x1), region = 65 }

// kernel: text_encoder_forward.14
= control target key start
LH: loop header
LB: loop body
LE: loop exit
PB: predicated region body
PF: predicated region fallthrough
CT: control target
= control target key end

     0   :  { %s693_s24 = smov 0   ;;  %s820_s0 = inlined_call_operand.vmem [shape: f32[16,32], index: 0, kind: input, shape index: {}]   ;;  %s821_s1 = inlined_call_operand.vmem [shape: f32[1,32], index: 1, kind: input, shape index: {}]   ;;  %s822_s2 = inlined_call_operand.vmem [shape: f32[1,32], index: 2, kind: input, shape index: {}]   ;;  %s823_s3 = inlined_call_operand.vmem [shape: f32[32,128], index: 3, kind: input, shape index: {}]   ;;  %s824_s4 = inlined_call_operand.vmem [shape: f32[1,128], index: 4, kind: input, shape index: {}]   ;;  %s825_s5 = inlined_call_operand.vmem [shape: f32[128,32], index: 5, kind: input, shape index: {}]   ;;  %s826_s6 = inlined_call_operand.vmem [shape: f32[1,32], index: 6, kind: input, shape index: {}]   ;;  %s827_s7 = inlined_call_operand.vmem [shape: f32[16,32], index: 7, kind: output, shape index: {}]  }
   0x1 LB: > { %s547_s25 = sadd.s32 4294967295, %s649_s24   ;;  %p551_p0 = scmp.ge.s32.totalorder %s649_s24, 1  ;;  %s649_s24 = sphi %s693_s24, %s17_s24  }
   0x2   : > { %p236_p1 = scmp.lt.s32.totalorder %s649_s24, 3 }
   0x4   : > { %p237_p2 = pnand %p551_p0, %p236_p1 }
   0x5   : > { %p266_p3 = scmp.lt.s32.totalorder (!%p237_p2), %s547_s25, 1 }
   0x6   : > { %240 = sbr.rel (%p237_p2) target bundleno = 744 (0x2e8), region = 48 }
   0xb   : > { %s829_s25 = smov (!%p266_p3, %s547_s25), 1  ;;  %vm277_vm0 = vcmask 261120   ;;  %v309_v7 = vld [vmem:[%s823_s3 + $0x18] sm:$0xff]  ;;  %v651_v8 = vmov 0.0   ;;  %v308_v9 = vld [vmem:[%s823_s3 + $0x10] sm:$0xff]  ;;  %vm652_vm1 = vmmov 0  }
   0xc   : > { %s552_s26 = sshll.u32 %s829_s25, 3  ;;  %583 = vmatprep.subr.mxu0 %v651_v8  ;;  %591 = vmatprep.mubr.msk.f32.mxu0 %vm652_vm1, %v651_v8  ;;  %v307_v10 = vld [vmem:[%s823_s3 + $0x8] sm:$0xff]  ;;  %v306_v11 = vld [vmem:[%s823_s3] sm:$0xff]  ;;  %v414_v21 = vld [vmem:[%s825_s5 + $0x78] sm:$0xff] }
   0xd   : > { %s269_s29 = scalar_lea.vmem %s820_s0, %s552_s26  ;;  %584 = vmatpush3.msra.mxu0 %v309_v7  ;;  %594 = vmatprep.subr.mxu1 %v651_v8  ;;  %v554_v16 = vld [vmem:[%s821_s1] ss:$0 sm:$0xff]  ;;  %v413_v22 = vld [vmem:[%s825_s5 + $0x70] sm:$0xff]  ;;  %v412_v23 = vld [vmem:[%s825_s5 + $0x68] sm:$0xff]  ;;  %s273_s17 = scalar_lea.vmem %s827_s7, %s552_s26 }
   0xe   : > { %v709_v0 = vld [vmem:[%s269_s29] sm:$0xff]  ;;  %585 = vmatprep.subr.mxu0 %v651_v8  ;;  %626 = vmatprep.mubr.msk.f32.mxu1 %vm652_vm1, %v651_v8  ;;  %v410_v25 = vld [vmem:[%s825_s5 + $0x58] sm:$0xff]  ;;  %v409_v26 = vld [vmem:[%s825_s5 + $0x50] sm:$0xff] }
   0xf   : > { %v278_v1 = vsel %vm277_vm0, %v709_v0, 0.0  ;;  %586 = vmatpush3.msra.mxu0 %v308_v9  ;;  %v555_v18 = vld [vmem:[%s822_s2] ss:$0 sm:$0xff]  ;;  %595 = vmatpush3.msra.mxu1 %v414_v21  ;;  %v408_v27 = vld [vmem:[%s825_s5 + $0x48] sm:$0xff]  ;;  %v406_v29 = vld [vmem:[%s825_s5 + $0x38] sm:$0xff] }
  0x10   : > { %279 = vadd.xlane.f32.xlu0 %v278_v1  ;;  %587 = vmatprep.subr.mxu0 %v651_v8  ;;  %v411_v24 = vld [vmem:[%s825_s5 + $0x60] sm:$0xff]  ;;  %v405_v30 = vld [vmem:[%s825_s5 + $0x30] sm:$0xff]  ;;  %v404_v31 = vld [vmem:[%s825_s5 + $0x28] sm:$0xff] }
  0x11   : > { %588 = vmatpush3.msra.mxu0 %v307_v10  ;;  %596 = vmatprep.subr.mxu1 %v651_v8  ;;  %v407_v28 = vld [vmem:[%s825_s5 + $0x40] sm:$0xff]  ;;  %v402_v33 = vld [vmem:[%s825_s5 + $0x18] sm:$0xff]  ;;  %v401_v34 = vld [vmem:[%s825_s5 + $0x10] sm:$0xff] }
  0x12   : > { %589 = vmatprep.subr.mxu0 %v651_v8  ;;  %597 = vmatpush3.msra.mxu1 %v413_v22  ;;  %v403_v32 = vld [vmem:[%s825_s5 + $0x20] sm:$0xff]  ;;  %v400_v35 = vld [vmem:[%s825_s5 + $0x8] sm:$0xff] }
  0x13   : > { %590 = vmatpush3.msra.mxu0 %v306_v11  ;;  %598 = vmatprep.subr.mxu1 %v651_v8  ;;  %v399_v36 = vld [vmem:[%s825_s5] sm:$0xff] }
  0x14   : > { %599 = vmatpush3.msra.mxu1 %v412_v23  ;;  %v556_v37 = vld [vmem:[%s824_s4] ss:$0 sm:$0xff] }
  0x15   : > { %600 = vmatprep.subr.mxu1 %v651_v8  ;;  %v558_v50 = vld [vmem:[%s826_s6] ss:$0 sm:$0xff] }
  0x16   : > { %601 = vmatpush3.msra.mxu1 %v411_v24 }
  0x17   : > { %602 = vmatprep.subr.mxu1 %v651_v8 }
  0x18   : > { %603 = vmatpush3.msra.mxu1 %v410_v25 }
  0x19   : > { %604 = vmatprep.subr.mxu1 %v651_v8 }
  0x1a   : > { %605 = vmatpush3.msra.mxu1 %v409_v26 }
  0x1b   : > { %606 = vmatprep.subr.mxu1 %v651_v8 }
  0x1c   : > { %607 = vmatpush3.msra.mxu1 %v408_v27 }
  0x1d   : > { %608 = vmatprep.subr.mxu1 %v651_v8 }
  0x1e   : > { %609 = vmatpush3.msra.mxu1 %v407_v28 }
  0x1f   : > { %610 = vmatprep.subr.mxu1 %v651_v8 }
  0x20   : > { %611 = vmatpush3.msra.mxu1 %v406_v29 }
  0x21   : > { %612 = vmatprep.subr.mxu1 %v651_v8 }
  0x22   : > { %613 = vmatpush3.msra.mxu1 %v405_v30 }
  0x23   : > { %614 = vmatprep.subr.mxu1 %v651_v8 }
  0x24   : > { %615 = vmatpush3.msra.mxu1 %v404_v31 }
  0x25   : > { %616 = vmatprep.subr.mxu1 %v651_v8 }
  0x26   : > { %617 = vmatpush3.msra.mxu1 %v403_v32 }
  0x27   : > { %618 = vmatprep.subr.mxu1 %v651_v8 }
  0x28   : > { %619 = vmatpush3.msra.mxu1 %v402_v33 }
  0x29   : > { %620 = vmatprep.subr.mxu1 %v651_v8 }
  0x2a   : > { %621 = vmatpush3.msra.mxu1 %v401_v34 }
  0x2b   : > { %622 = vmatprep.subr.mxu1 %v651_v8 }
  0x2c   : > { %623 = vmatpush3.msra.mxu1 %v400_v35 }
  0x2d   : > { %624 = vmatprep.subr.mxu1 %v651_v8 }
  0x2e   : > { %625 = vmatpush3.msra.mxu1 %v399_v36 }
  0x99   : > { %v280_v2 = vpop.xlane.xlu0 %279 }
  0x9a   : > { %v282_v3 = vmul.f32 0.03125, %v280_v2 }
  0x9c   : > { %v283_v4 = vsub.f32 %v709_v0, %v282_v3 }
  0x9e   : > { %v284_v5 = vmul.f32 %v283_v4, %v283_v4 }
  0xa0   : > { %v285_v6 = vsel %vm277_vm0, %v284_v5, 0.0 }
  0xa1   : > { %286 = vadd.xlane.f32.xlu0 %v285_v6 }
 0x12a   : > { %v287_v12 = vpop.xlane.xlu0 %286 }
 0x12b   : > { %v288_v13 = vmul.f32 0.03125, %v287_v12 }
 0x12d   : > { %v289_v14 = vadd.f32 1e-05, %v288_v13 }
 0x12f   : > { %639 = vrsqrt.f32 %v289_v14 }
 0x13c   : > { %v640_v15 = vpop.eup %639 }
 0x13d   : > { %v291_v17 = vmul.f32 %v640_v15, %v283_v4 }
 0x13f   : > { %v298_v19 = vmul.f32 %v554_v16, %v291_v17 }
 0x141   : > { %v305_v20 = vadd.f32 %v555_v18, %v298_v19 }
 0x143   : > { %592 = vmatmul.mubr.msk.f32.vlgmr.msra.gmra.mxu0 %vm277_vm0, %v305_v20 }
 0x203   : > { %v386_v38 = vpop.f32.mrf.mxu0 }
 0x204   : > { %v387_v39 = vadd.f32 %v556_v37, %v386_v38 }
 0x205   : > { %v593_v40 = vpop.f32.mrf.mxu0 }
 0x206   : > { %v391_v41 = vmul.f32 0.044715, %v387_v39  ;;  %v390_v47 = vmul.f32 0.5, %v387_v39 }
 0x208   : > { %v392_v42 = vmul.f32 %v391_v41, %v387_v39 }
 0x20a   : > { %v393_v43 = vmul.f32 %v392_v42, %v387_v39 }
 0x20c   : > { %v394_v44 = vadd.f32 %v393_v43, %v387_v39 }
 0x20e   : > { %v395_v45 = vmul.f32 0.7978846, %v394_v44 }
 0x210   : > { %641 = vtanh.f32 %v395_v45 }
 0x21d   : > { %v642_v46 = vpop.eup %641 }
 0x21e   : > { %v397_v48 = vadd.f32 1.0, %v642_v46 }
 0x220   : > { %v398_v49 = vmul.f32 %v397_v48, %v390_v47 }
 0x222   : > { %627 = vmatmul.mubr.f32.vlgmr.msra.gmra.mxu1 %v398_v49 }
 0x2e2   : > { %v488_v51 = vpop.f32.mrf.mxu1 }
 0x2e3   : > { %v489_v52 = vadd.f32 %v558_v50, %v488_v51 }
 0x2e4   : > { %v628_v53 = vpop.f32.mrf.mxu1 }
 0x2e5   : > { %v492_v54 = vadd.f32 %v489_v52, %v709_v0 }
 0x2e7   : > { %493 = vst.msk [vmem:[%s273_s17] sm:$0xff] %vm277_vm0, %v492_v54 }
 0x2e8 PF: > { %s17_s24 = sadd.s32 1, %s649_s24  }
 0x2e9   : > { %p14_p4 = scmp.ge.s32.totalorder %s17_s24, 4  }
 0x2eb   :  { %16 = sbr.rel (!%p14_p4) target bundleno = 1 (0x1), region = 78 }

// kernel: text_encoder_forward.19
= control target key start
LH: loop header
LB: loop body
LE: loop exit
PB: predicated region body
PF: predicated region fallthrough
CT: control target
= control target key end

     0   :  { %s458_s0 = inlined_call_operand.vmem [shape: s32[2], index: 0, kind: input, shape index: {}]   ;;  %s459_s1 = inlined_call_operand.vmem [shape: f32[16,1,32], index: 1, kind: input, shape index: {}]   ;;  %s460_s2 = inlined_call_operand.hbm [shape: f32[2,1,32], index: 2, kind: output, shape index: {}]  }
   0x1   :  { %s7_s11 = sshll.u32 %s458_s0, 4  ;;  %s8_s11 = int_to_ptr.vmem [resolvable:$true] %s7_s11 }
   0x2   :  { %s273_s12 = scalar_lea.vmem %s8_s11, 16  ;;  %p278_p1 = scmp.lt.s32.totalorder %s8_s11, %s8_s11 }
   0x3   :  { %p274_p0 = scmp.ne.s32.totalorder %s8_s11, %s273_s12  ;;  %p279_p2 = scmp.lt.s32.totalorder %s273_s12, %s273_s12 }
   0x5   :  { %p280_p3 = por %p279_p2, %p278_p1 }
   0x7   :  { %p281_p4 = pnand %p280_p3, %p274_p0 }
   0x9   :  { %284 = shalt.err (!%p281_p4)  }
   0xa   :  { %s349_s13 = smov [#allocation3]  }
   0xb   :  { %10 = dma.vmem_to_smem %s8_s11, 16, %s349_s13, [#allocation2] }
   0xc   :  { %327 = dma.done.wait [#allocation2], 16 }
   0xd   :  { %328 = vsyncadd [#allocation2], 4294967280 }
   0xe   :  { %12 = sfence }
   0xf   :  { %13 = vsyncpa [#allocation5], 0 }
  0x10   :  { %15 = vsyncpa [#allocation5 + $0x1], 0  ;;  %s369_s14 = smov 0   ;;  %s371_s15 = smov 0  }
  0x11   :  { %s373_s0 = smov 0   ;;  %s375_s16 = smov 0  }
  0x12 LB: > { %s390_s17 = sadd.s32 4294967295, %s347_s16   ;;  %s217_s18 = sadd.s32 4294967294, %s347_s16   ;;  %s347_s16 = sphi %s375_s16, %s466_s16   ;;  %s343_s0 = sphi %s373_s0, %s465_s0   ;;  %s339_s15 = sphi %s371_s15, %s464_s15   ;;  %s335_s14 = sphi %s369_s14, %s463_s14  }
  0x13   : > { %s394_s19 = sadd.s32 1, %s347_s16   ;;  %s60_s20 = sadd.s32 1, %s343_s0 }
  0x14   : > { %s57_s21 = ssub.s32 %s347_s16, %s394_s19  ;;  %p70_p5 = scmp.ne.s32.totalorder %s343_s0, %s339_s15 }
  0x15   : > { %p58_p6 = scmp.eq.s32.totalorder %s57_s21, 0  ;;  %p71_p7 = scmp.eq.s32.totalorder %s390_s17, 1 }
  0x16   : > { %p76_p8 = scmp.ne.s32.totalorder %s339_s15, %s335_s14  ;;  %p77_p9 = scmp.eq.s32.totalorder %s217_s18, 1 }
  0x17   : > { %s405_s22 = scalar_select %p58_p6, %s343_s0, %s60_s20  }
  0x18   : > { %p407_p10 = por %p71_p7, %p70_p5  ;;  %p411_p11 = por %p77_p9, %p76_p8 }
  0x19   : > { %p222_p12 = scmp.ge.s32.totalorder %s347_s16, 1  ;;  %p107_p13 = scmp.lt.s32.totalorder %s347_s16, 3 }
  0x1b   : > { %p108_p0 = pnand %p222_p12, %p107_p13 }
  0x1c   : > { %s128_s25 = sld [smem:[#allocation3 + %s390_s17]] (!%p108_p0)  ;;  %s223_s26 = sshll.u32 (!%p108_p0), %s390_s17, 3 }
  0x1d   : > { %111 = sbr.rel (%p108_p0) target bundleno = 228 (0xe4), region = 24  ;;  %s125_s3 = sand.u32 (!%p108_p0), 1, %s339_s15  }
  0x1e   : > { %s224_s4 = sshll.u32 (!%p108_p0), %s390_s17, 4  ;;  %s126_s5 = scalar_lea.vmem (!%p108_p0), [#allocation4], %s125_s3 }
  0x1f   : > { %s165_s6 = sshll.u32 (!%p108_p0), %s126_s5, 4  ;;  %s163_s9 = scalar_lea.hbm (!%p108_p0), %s460_s2, %s224_s4  ;;  %s166_s6 = int_to_ptr.vmem [resolvable:$true] %s165_s6 }
  0x20   : > { %s153_s10 = scalar_lea.sflag (!%p108_p0), [#allocation5], %s125_s3  ;;  %s285_s11 = scalar_lea.vmem (!%p108_p0), %s166_s6, 16 }
  0x21   : > { %p286_p2 = scmp.ne.s32.totalorder (!%p108_p0), %s166_s6, %s285_s11  ;;  %s350_s12 = smov (!%p108_p0), [#allocation4]  }
  0x22   : > { %s129_s27 = sadd.s32 %s223_s26, %s128_s25  ;;  %vm138_vm0 = vcmask 253952   ;;  %s289_s13 = sshll.u32 %s350_s12, 4  ;;  %s290_s13 = int_to_ptr.vmem [resolvable:$false] %s289_s13 }
  0x23   : > { %p130_p1 = scmp.lt.s32.totalorder %s129_s27, 15  ;;  %p287_p3 = pnand %p286_p2, %p407_p10 }
  0x24   : > { %s291_s17 = scalar_lea.vmem %s290_s13, 32  ;;  %p292_p5 = scmp.lt.s32.totalorder %s166_s6, %s290_s13 }
  0x25   : > { %s468_s27 = smov (!%p130_p1, %s129_s27), 15  ;;  %p288_p4 = pneg %p287_p3 }
  0x26   : > { %s132_s30 = scalar_lea.vmem %s459_s1, %s468_s27  ;;  %p293_p6 = scmp.lt.s32.totalorder %s291_s17, %s285_s11 }
  0x27   : > { %v136_v0 = vld [vmem:[%s132_s30] sm:$0x1] }
  0x28   : > { %v137_v1 = vmul.f32 %v136_v0, %v136_v0  ;;  %p294_p7 = por %p293_p6, %p292_p5 }
  0x2a   : > { %v139_v2 = vsel %vm138_vm0, %v137_v1, 0.0  ;;  %p295_p8 = pnand %p294_p7, %p288_p4 }
  0x2b   : > { %140 = vadd.xlane.f32.xlu0 %v139_v2 }
  0xb4   : > { %v141_v3 = vpop.xlane.xlu0 %140 }
  0xb5   : > { %269 = vrsqrt.f32 %v141_v3  ;;  %vm144_vm1 = vcmp.eq.f32.partialorder %v141_v3, inf  ;;  %v147_v6 = vand.u32 2147483648, %v141_v3  ;;  %vm146_vm2 = vcmp.eq.f32.partialorder %v141_v3, 0.0 }
  0xc2   : > { %v270_v4 = vpop.eup %269 }
  0xc3   : > { %v143_v5 = vmul.f32 %v270_v4, %v141_v3 }
  0xc5   : > { %v145_v7 = vsel %vm144_vm1, %v141_v3, %v143_v5 }
  0xc6   : > { %v148_v8 = vsel %vm146_vm2, %v147_v6, %v145_v7 }
  0xc7   : > { %271 = vrcp.f32 %v148_v8 }
  0xd4   : > { %v272_v9 = vpop.eup %271 }
  0xd5   : > { %v150_v10 = vmul.f32 %v272_v9, %v136_v0 }
  0xd7   : > { %151 = vst.msk [vmem:[%s126_s5] sm:$0x1] %vm138_vm0, %v150_v10 }
  0xd8   : > { %298 = shalt.err (!%p295_p8)
}
  0xd9   : > { %s299_s18 = scalar_lea.hbm %s163_s9, 16  ;;  %s303_s25 = scalar_lea.hbm %s460_s2, 32 }
  0xda   : > { %p300_p9 = scmp.ne.s32.totalorder %s163_s9, %s299_s18  ;;  %p304_p0 = scmp.lt.s32.totalorder %s163_s9, %s460_s2 }
  0xdb   : > { %p305_p1 = scmp.lt.s32.totalorder %s303_s25, %s299_s18 }
  0xdc   : > { %p301_p12 = pnand %p300_p9, %p407_p10 }
  0xdd   : > { %p306_p2 = por %p305_p1, %p304_p0 }
  0xde   : > { %p302_p13 = pneg %p301_p12 }
  0xe0   : > { %p307_p3 = pnand %p306_p2, %p302_p13 }
  0xe2   : > { %310 = shalt.err (!%p307_p3)
}
  0xe3   : > { %229 = dma.vmem_to_hbm [thread:$0]  (%p407_p10), %s166_s6, 16, %s163_s9, %s153_s10  }
  0xe4 PF: > { %p235_p4 = scmp.ge.s32.totalorder %s347_s16, 2  ;;  %s177_s28 = sand.u32 1, %s335_s14  }
  0xe5   : > { %s178_s29 = scalar_lea.sflag [#allocation5], %s177_s28 }
  0xe6   : > { %p232_p5 = pnand %p235_p4, %p411_p11 }
  0xe8   : > { %p233_p6 = pneg %p232_p5 }
  0xea   : > { %330 = dma.done.wait (%p233_p6), %s178_s29, 16  }
  0xeb   : > { %332 = vsyncadd (%p233_p6), %s178_s29, 4294967280  ;;  %p18_p7 = scmp.ge.s32.totalorder %s394_s19, 4   ;;  %s463_s14 = smov %s339_s15 }
  0xec   : > { %s464_s15 = smov %s343_s0  ;;  %s465_s0 = smov %s405_s22 }
  0xed   : > { %s466_s16 = smov %s394_s19  ;;  %20 = sbr.rel (!%p18_p7) target bundleno = 18 (0x12), region = 59 }
  0xf2   :  { %182 = vsyncpa [#allocation5], 1 }
  0xf3   :  { %184 = vsyncpa [#allocation5 + $0x1], 1 }

</bundles_post_ra>
